<compile_context>
chip_gen: v5e
topology: v5e:2x2
jax: 0.10.0
libtpu: 0.0.40
codegen_flags: <defaults>
</compile_context>

<pallas_src>
import functools

import jax
import jax.numpy as jnp
from jax import lax
from jax.experimental import pallas as pl
from jax.experimental.pallas import tpu as pltpu

EPS = 1e-5
_LANE = 128      # vreg lane width  (last dim)
_SUBLANE = 8     # vreg sublane width (second-to-last dim)


def _round_up(n, m):
    return ((n + m - 1) // m) * m


# ----------------------------- kernels ------------------------------------ #
def _revin_norm_kernel(x_ref, w_ref, b_ref, y_ref, stats_ref, *, eps, t_valid):
    """Channels-first block (TB, Cp, Tp); time is the dense lane axis."""
    x = x_ref[...].astype(jnp.float32)                          # (TB, Cp, Tp)
    inv_t = jnp.float32(1.0 / t_valid)

    # Padded time columns (wrapper zero-pads x) contribute 0 to the sum.
    mean = jnp.sum(x, axis=-1, keepdims=True) * inv_t           # (TB, Cp, 1)
    centered = x - mean
    if x.shape[-1] != t_valid:
        lane = lax.broadcasted_iota(jnp.int32, x.shape, x.ndim - 1)
        centered = jnp.where(lane < t_valid, centered, 0.0)
    var = jnp.sum(centered * centered, axis=-1, keepdims=True) * inv_t
    stdev = jnp.sqrt(var + eps)                                 # (TB, Cp, 1)

    # Per-(batch, channel) scale, broadcast along the lane-dense time axis.
    w = w_ref[...][None, :, :]                                  # (1, Cp, 1)
    b = b_ref[...][None, :, :]                                  # (1, Cp, 1)
    scale = w / (stdev + eps)                                   # == (x-mean)/(stdev+eps)*w

    # y = centered*scale + b: 'centered' already exists for the variance, so
    # this avoids folding mean into an offset (no cancellation, fewer temps).
    y_ref[...] = (centered * scale + b).astype(y_ref.dtype)

    # Fused (mean, stdev) output: one small DMA per block instead of two.
    stats_ref[...] = jnp.concatenate([mean, stdev], axis=-1).astype(stats_ref.dtype)


def _revin_denorm_kernel(x_ref, w_ref, b_ref, stats_ref, y_ref, *, eps):
    # ((x - b) / (w + eps^2)) * stdev + mean  ==  x * scale + offset
    x = x_ref[...].astype(jnp.float32)                          # (TB, Cp, Tp)
    w = w_ref[...][None, :, :]                                  # (1, Cp, 1)
    b = b_ref[...][None, :, :]
    stats = stats_ref[...].astype(jnp.float32)                  # (TB, Cp, 2)
    mean = stats[:, :, 0:1]
    stdev = stats[:, :, 1:2]
    scale = stdev / (w + eps * eps)                             # (TB, Cp, 1)
    offset = mean - b * scale
    y_ref[...] = (x * scale + offset).astype(y_ref.dtype)


# ----------------------------- helpers ------------------------------------- #
def _vmem_capacity_bytes():
    try:
        return int(pltpu.get_tpu_info().vmem_capacity_bytes)
    except Exception:
        return 64 * 1024 * 1024            # conservative: v7x per-TC VMEM


def _budgets():
    """Generation-specific (target_block_bytes, vmem_soft_cap_bytes)."""
    cap = _vmem_capacity_bytes()
    if cap >= 100 * 1024 * 1024:           # v5e / v6e: 128 MiB VMEM
        target_block = 8 * 1024 * 1024
    else:                                  # v7x: 64 MiB per-TC VMEM
        target_block = 4 * 1024 * 1024
    soft_cap = min(int(cap * 0.70), 96 * 1024 * 1024)
    return target_block, soft_cap


def _pick_block_batch(B, Cp, Tp, itemsize, target_block_bytes, soft_cap_bytes):
    """Batch rows per block, using the *padded* tile footprint and real dtype."""
    io_bytes = Cp * Tp * itemsize          # one padded batch row of x (== y)
    f32_bytes = Cp * Tp * 4                # f32 intermediates inside the kernel
    # double-buffered x block + double-buffered y block + ~2 live f32 temps
    per_row_total = 2 * io_bytes + 2 * io_bytes + 2 * f32_bytes

    tb = max(1, target_block_bytes // max(io_bytes, 1))
    tb = min(tb, B)
    while tb > 1 and tb * per_row_total > soft_cap_bytes:
        tb -= 1
    # Prefer >= 2 balanced grid steps so the 'parallel' batch axis can be
    # sharded across both TensorCores on megacore / v7x parts.
    if B >= 2:
        tb = min(tb, -(-B // 2))
    return tb


def _prepare_channels_first(x, Bp, Cp, Tp):
    """(B, T, C) -> zero-padded channels-first (Bp, Cp, Tp), time on lanes."""
    B, T, C = x.shape
    x_cf = jnp.transpose(x, (0, 2, 1))
    return jnp.pad(x_cf, ((0, Bp - B), (0, Cp - C), (0, Tp - T)))


def _prepare_param(p, Cp):
    C = p.shape[0]
    return jnp.pad(p.astype(jnp.float32), (0, Cp - C)).reshape(Cp, 1)


# ----------------------------- wrappers ------------------------------------ #
def revin_norm(x, weight, bias, eps=EPS):
    """x: (B, T, C). Returns (y (B,T,C), mean (B,1,C) f32, stdev (B,1,C) f32)."""
    B, T, C = x.shape
    itemsize = jnp.dtype(x.dtype).itemsize
    Cp = _round_up(C, _SUBLANE)
    Tp = _round_up(T, _LANE)
    target_block, soft_cap = _budgets()
    TB = _pick_block_batch(B, Cp, Tp, itemsize, target_block, soft_cap)
    Bp = _round_up(B, TB)

    x_cf = _prepare_channels_first(x, Bp, Cp, Tp)
    w_cf = _prepare_param(weight, Cp)
    b_cf = _prepare_param(bias, Cp)

    kernel = functools.partial(_revin_norm_kernel, eps=eps, t_valid=T)
    cost = pl.CostEstimate(
        flops=5 * Bp * Cp * Tp,
        transcendentals=Bp * Cp,
        bytes_accessed=2 * Bp * Cp * Tp * itemsize + Bp * Cp * 2 * 4,
    )
    y_cf, stats = pl.pallas_call(
        kernel,
        out_shape=(
            jax.ShapeDtypeStruct((Bp, Cp, Tp), x.dtype),
            jax.ShapeDtypeStruct((Bp, Cp, 2), jnp.float32),
        ),
        grid_spec=pltpu.PrefetchScalarGridSpec(
            num_scalar_prefetch=0,
            grid=(Bp // TB,),
            in_specs=[
                pl.BlockSpec((TB, Cp, Tp), lambda i: (i, 0, 0)),
                pl.BlockSpec((Cp, 1), lambda i: (0, 0)),
                pl.BlockSpec((Cp, 1), lambda i: (0, 0)),
            ],
            out_specs=[
                pl.BlockSpec((TB, Cp, Tp), lambda i: (i, 0, 0)),
                pl.BlockSpec((TB, Cp, 2), lambda i: (i, 0, 0)),
            ],
        ),
        compiler_params=pltpu.CompilerParams(
            dimension_semantics=("parallel",),
            vmem_limit_bytes=soft_cap,
        ),
        cost_estimate=cost,
    )(x_cf, w_cf, b_cf)

    y = jnp.transpose(y_cf[:B, :C, :T], (0, 2, 1))
    mean = stats[:B, :C, 0][:, None, :]
    stdev = stats[:B, :C, 1][:, None, :]
    return y, mean, stdev


def revin_denorm(x, weight, bias, mean, stdev, eps=EPS):
    """Inverse transform. x (B,T,C), mean/stdev (B,1,C) from revin_norm."""
    B, T, C = x.shape
    itemsize = jnp.dtype(x.dtype).itemsize
    Cp = _round_up(C, _SUBLANE)
    Tp = _round_up(T, _LANE)
    target_block, soft_cap = _budgets()
    TB = _pick_block_batch(B, Cp, Tp, itemsize, target_block, soft_cap)
    Bp = _round_up(B, TB)

    x_cf = _prepare_channels_first(x, Bp, Cp, Tp)
    w_cf = _prepare_param(weight, Cp)
    b_cf = _prepare_param(bias, Cp)
    mean2 = jnp.pad(mean.reshape(B, C).astype(jnp.float32), ((0, Bp - B), (0, Cp - C)))
    std2 = jnp.pad(stdev.reshape(B, C).astype(jnp.float32), ((0, Bp - B), (0, Cp - C)))
    stats = jnp.stack([mean2, std2], axis=-1)                   # (Bp, Cp, 2)

    kernel = functools.partial(_revin_denorm_kernel, eps=eps)
    cost = pl.CostEstimate(
        flops=2 * Bp * Cp * Tp,
        transcendentals=0,
        bytes_accessed=2 * Bp * Cp * Tp * itemsize + Bp * Cp * 2 * 4,
    )
    y_cf = pl.pallas_call(
        kernel,
        out_shape=jax.ShapeDtypeStruct((Bp, Cp, Tp), x.dtype),
        grid_spec=pltpu.PrefetchScalarGridSpec(
            num_scalar_prefetch=0,
            grid=(Bp // TB,),
            in_specs=[
                pl.BlockSpec((TB, Cp, Tp), lambda i: (i, 0, 0)),
                pl.BlockSpec((Cp, 1), lambda i: (0, 0)),
                pl.BlockSpec((Cp, 1), lambda i: (0, 0)),
                pl.BlockSpec((TB, Cp, 2), lambda i: (i, 0, 0)),
            ],
            out_specs=pl.BlockSpec((TB, Cp, Tp), lambda i: (i, 0, 0)),
        ),
        compiler_params=pltpu.CompilerParams(
            dimension_semantics=("parallel",),
            vmem_limit_bytes=soft_cap,
        ),
        cost_estimate=cost,
    )(x_cf, w_cf, b_cf, stats)

    return jnp.transpose(y_cf[:B, :C, :T], (0, 2, 1))


# ----------------------------- reference ----------------------------------- #
def _ref_norm(x, w, b, eps=EPS):
    mean = jnp.mean(x, axis=1, keepdims=True)
    var = jnp.var(x, axis=1, keepdims=True)           # biased, matches unbiased=False
    stdev = jnp.sqrt(var + eps)
    y = (x - mean) / (stdev + eps)
    return y * w + b, mean, stdev


def _ref_denorm(x, w, b, mean, stdev, eps=EPS):
    x = (x - b) / (w + eps * eps)
    return x * stdev + mean


def _run_case(key, B, T, C):
    x = jax.random.normal(key, (B, T, C), dtype=jnp.float32) * 3.0 + 1.5

    # deterministic params, exactly as RevIN._init_params
    affine_weight = jnp.ones((C,), dtype=jnp.float32)
    affine_bias = jnp.zeros((C,), dtype=jnp.float32)

    # mode='norm'
    y, mean, stdev = revin_norm(x, affine_weight, affine_bias)
    y = jax.block_until_ready(y)

    # mode='denorm'
    x_rec = revin_denorm(y, affine_weight, affine_bias, mean, stdev)
    x_rec = jax.block_until_ready(x_rec)

    # correctness checks against pure-JAX reference
    y_ref, mean_ref, stdev_ref = _ref_norm(x, affine_weight, affine_bias)
    x_rec_ref = _ref_denorm(y_ref, affine_weight, affine_bias, mean_ref, stdev_ref)

    assert jnp.allclose(y, y_ref, atol=1e-5, rtol=1e-5)
    assert jnp.allclose(mean, mean_ref, atol=1e-5, rtol=1e-5)
    assert jnp.allclose(stdev, stdev_ref, atol=1e-5, rtol=1e-5)
    assert jnp.allclose(x_rec, x_rec_ref, atol=1e-5, rtol=1e-5)
    # approximate round trip (eps asymmetry is in the module spec)
    assert jnp.allclose(x_rec, x, atol=1e-3, rtol=1e-3)


# ----------------------------- main ---------------------------------------- #
if __name__ == "__main__":
    key = jax.random.PRNGKey(0)
    k1, k2 = jax.random.split(key)

    # Toy shapes matching the module convention (batch, seq_len, num_features).
    _run_case(k1, B=2, T=16, C=8)
    # Larger shape exercising multi-batch blocks and >=2-step grid.
    _run_case(k2, B=8, T=32, C=16)

    print("KERNEL_OK")
</pallas_src>

<mosaic_0001>
module attributes {stable_mosaic.version = 11 : i64} {
  func.func @_revin_norm_kernel(%arg0: i32, %arg1: memref<1x8x128xf32, #tpu.memory_space<vmem>>, %arg2: memref<8x1xf32, #tpu.memory_space<vmem>>, %arg3: memref<8x1xf32, #tpu.memory_space<vmem>>, %arg4: memref<1x8x128xf32, #tpu.memory_space<vmem>>, %arg5: memref<1x8x2xf32, #tpu.memory_space<vmem>>) attributes {dimension_semantics = [#tpu.dimension_semantics<parallel>], iteration_bounds = array<i64: 2>, scalar_prefetch = 0 : i64, scratch_operands = 0 : i64, tpu.core_type = #tpu.core_type<tc>, window_params = [{transform_indices = @transform_0, window_bounds = array<i64: 1, 8, 128>}, {pipeline_mode = #tpu.pipeline_mode<synchronous>, transform_indices = @transform_1, window_bounds = array<i64: 8, 1>}, {pipeline_mode = #tpu.pipeline_mode<synchronous>, transform_indices = @transform_2, window_bounds = array<i64: 8, 1>}, {transform_indices = @transform_3, window_bounds = array<i64: 1, 8, 128>}, {transform_indices = @transform_4, window_bounds = array<i64: 1, 8, 2>}]} {
    %c0 = arith.constant 0 : index
    %c0_0 = arith.constant 0 : index
    %c0_1 = arith.constant 0 : index
    %0 = vector.load %arg1[%c0, %c0_0, %c0_1] : memref<1x8x128xf32, #tpu.memory_space<vmem>>, vector<1x8x128xf32>
    %cst = arith.constant dense<0.000000e+00> : vector<1x8xf32>
    %1 = vector.multi_reduction <add>, %0, %cst [2] : vector<1x8x128xf32> to vector<1x8xf32>
    %2 = vector.shape_cast %1 : vector<1x8xf32> to vector<1x8x1xf32>
    %cst_2 = arith.constant 6.250000e-02 : f32
    %3 = vector.broadcast %cst_2 : f32 to vector<1x8x1xf32>
    %4 = arith.mulf %2, %3 : vector<1x8x1xf32>
    %5 = vector.broadcast %4 : vector<1x8x1xf32> to vector<1x8x128xf32>
    %6 = arith.subf %0, %5 : vector<1x8x128xf32>
    %7 = tpu.iota {dimensions = array<i32: 2>} : vector<1x8x128xi32>
    %c16_i32 = arith.constant 16 : i32
    %8 = vector.broadcast %c16_i32 : i32 to vector<1x8x128xi32>
    %9 = arith.cmpi slt, %7, %8 : vector<1x8x128xi32>
    %cst_3 = arith.constant 0.000000e+00 : f32
    %10 = vector.broadcast %cst_3 : f32 to vector<1x8x128xf32>
    %11 = arith.select %9, %6, %10 : vector<1x8x128xi1>, vector<1x8x128xf32>
    %12 = arith.mulf %11, %11 : vector<1x8x128xf32>
    %cst_4 = arith.constant dense<0.000000e+00> : vector<1x8xf32>
    %13 = vector.multi_reduction <add>, %12, %cst_4 [2] : vector<1x8x128xf32> to vector<1x8xf32>
    %14 = vector.shape_cast %13 : vector<1x8xf32> to vector<1x8x1xf32>
    %cst_5 = arith.constant 6.250000e-02 : f32
    %15 = vector.broadcast %cst_5 : f32 to vector<1x8x1xf32>
    %16 = arith.mulf %14, %15 : vector<1x8x1xf32>
    %cst_6 = arith.constant 9.99999974E-6 : f32
    %17 = vector.broadcast %cst_6 : f32 to vector<1x8x1xf32>
    %18 = arith.addf %16, %17 : vector<1x8x1xf32>
    %19 = math.sqrt %18 : vector<1x8x1xf32>
    %c0_7 = arith.constant 0 : index
    %c0_8 = arith.constant 0 : index
    %20 = vector.load %arg2[%c0_7, %c0_8] : memref<8x1xf32, #tpu.memory_space<vmem>>, vector<8x1xf32>
    %21 = vector.shape_cast %20 : vector<8x1xf32> to vector<1x8x1xf32>
    %c0_9 = arith.constant 0 : index
    %c0_10 = arith.constant 0 : index
    %22 = vector.load %arg3[%c0_9, %c0_10] : memref<8x1xf32, #tpu.memory_space<vmem>>, vector<8x1xf32>
    %23 = vector.shape_cast %22 : vector<8x1xf32> to vector<1x8x1xf32>
    %cst_11 = arith.constant 9.99999974E-6 : f32
    %24 = vector.broadcast %cst_11 : f32 to vector<1x8x1xf32>
    %25 = arith.addf %19, %24 : vector<1x8x1xf32>
    %26 = arith.divf %21, %25 : vector<1x8x1xf32>
    %27 = vector.broadcast %26 : vector<1x8x1xf32> to vector<1x8x128xf32>
    %28 = arith.mulf %11, %27 : vector<1x8x128xf32>
    %29 = vector.broadcast %23 : vector<1x8x1xf32> to vector<1x8x128xf32>
    %30 = arith.addf %28, %29 : vector<1x8x128xf32>
    %c0_12 = arith.constant 0 : index
    %c0_13 = arith.constant 0 : index
    %c0_14 = arith.constant 0 : index
    %31 = vector.load %arg4[%c0_12, %c0_13, %c0_14] : memref<1x8x128xf32, #tpu.memory_space<vmem>>, vector<1x8x128xf32>
    tpu.vector_store %arg4[%c0_12, %c0_13, %c0_14], %30 {strides = array<i32>} : memref<1x8x128xf32, #tpu.memory_space<vmem>>, vector<1x8x128xf32>,
    %32 = tpu.concatenate %4, %19 in 2 : vector<1x8x1xf32>, vector<1x8x1xf32> -> vector<1x8x2xf32>
    %c0_15 = arith.constant 0 : index
    %c0_16 = arith.constant 0 : index
    %c0_17 = arith.constant 0 : index
    %33 = vector.load %arg5[%c0_15, %c0_16, %c0_17] : memref<1x8x2xf32, #tpu.memory_space<vmem>>, vector<1x8x2xf32>
    tpu.vector_store %arg5[%c0_15, %c0_16, %c0_17], %32 {strides = array<i32>} : memref<1x8x2xf32, #tpu.memory_space<vmem>>, vector<1x8x2xf32>,
    return
  }
  func.func @transform_0(%arg0: i32) -> (i32, i32, i32) {
    %c0_i32 = arith.constant 0 : i32
    %c0_i32_0 = arith.constant 0 : i32
    %c0_i32_1 = arith.constant 0 : i32
    return %arg0, %c0_i32, %c0_i32_0 : i32, i32, i32
  }
  func.func @transform_1(%arg0: i32) -> (i32, i32) {
    %c0_i32 = arith.constant 0 : i32
    %c0_i32_0 = arith.constant 0 : i32
    %c0_i32_1 = arith.constant 0 : i32
    return %c0_i32, %c0_i32_0 : i32, i32
  }
  func.func @transform_2(%arg0: i32) -> (i32, i32) {
    %c0_i32 = arith.constant 0 : i32
    %c0_i32_0 = arith.constant 0 : i32
    %c0_i32_1 = arith.constant 0 : i32
    return %c0_i32, %c0_i32_0 : i32, i32
  }
  func.func @transform_3(%arg0: i32) -> (i32, i32, i32) {
    %c0_i32 = arith.constant 0 : i32
    %c0_i32_0 = arith.constant 0 : i32
    %c0_i32_1 = arith.constant 0 : i32
    return %arg0, %c0_i32, %c0_i32_0 : i32, i32, i32
  }
  func.func @transform_4(%arg0: i32) -> (i32, i32, i32) {
    %c0_i32 = arith.constant 0 : i32
    %c0_i32_0 = arith.constant 0 : i32
    %c0_i32_1 = arith.constant 0 : i32
    return %arg0, %c0_i32, %c0_i32_0 : i32, i32, i32
  }
}

</mosaic_0001>

<bundles_post_ra>
// kernel: tpu_custom_call.1
= control target key start
LH: loop header
LB: loop body
LE: loop exit
PB: predicated region body
PF: predicated region fallthrough
CT: control target
= control target key end

     0   :  { %10 = vsyncpa [#allocation3], 0  ;;  %s619_s0 = inlined_call_operand.vmem [shape: f32[2,8,128], index: 0, kind: input, shape index: {}]   ;;  %s620_s1 = inlined_call_operand.vmem [shape: f32[8,1], index: 1, kind: input, shape index: {}]   ;;  %s621_s2 = inlined_call_operand.vmem [shape: f32[8,1], index: 2, kind: input, shape index: {}]   ;;  %s622_s3 = inlined_call_operand.hbm [shape: f32[2,8,128], index: 3, kind: output, shape index: {0}]   ;;  %s623_s4 = inlined_call_operand.vmem [shape: f32[2,8,2], index: 4, kind: output, shape index: {1}]  }
   0x1   :  { %12 = vsyncpa [#allocation3 + $0x1], 0  ;;  %s518_s15 = smov 0   ;;  %s520_s16 = smov 0  }
   0x2   :  { %s522_s17 = smov 0   ;;  %s524_s18 = smov 0  }
   0x3 LB: > { %s539_s19 = sadd.s32 4294967295, %s490_s18   ;;  %s371_s20 = sadd.s32 4294967294, %s490_s18   ;;  %s490_s18 = sphi %s524_s18, %s629_s18   ;;  %s486_s17 = sphi %s522_s17, %s628_s17   ;;  %s482_s16 = sphi %s520_s16, %s627_s16   ;;  %s478_s15 = sphi %s518_s15, %s626_s15  }
   0x4   : > { %s543_s21 = sadd.s32 1, %s490_s18   ;;  %s93_s22 = sadd.s32 1, %s486_s17 }
   0x5   : > { %s90_s23 = ssub.s32 %s490_s18, %s543_s21  ;;  %p103_p0 = scmp.ne.s32.totalorder %s486_s17, %s482_s16 }
   0x6   : > { %p91_p1 = scmp.eq.s32.totalorder %s90_s23, 0  ;;  %p104_p2 = scmp.eq.s32.totalorder %s539_s19, 1 }
   0x7   : > { %p109_p3 = scmp.ne.s32.totalorder %s482_s16, %s478_s15  ;;  %p110_p4 = scmp.eq.s32.totalorder %s371_s20, 1 }
   0x8   : > { %s554_s24 = scalar_select %p91_p1, %s486_s17, %s93_s22  }
   0x9   : > { %p556_p5 = por %p104_p2, %p103_p0  ;;  %p560_p6 = por %p110_p4, %p109_p3 }
   0xa   : > { %p374_p7 = scmp.ge.s32.totalorder %s490_s18, 1  ;;  %p167_p8 = scmp.lt.s32.totalorder %s490_s18, 3 }
   0xc   : > { %p168_p9 = pnand %p374_p7, %p167_p8 }
   0xd   : > { %p196_p10 = scmp.lt.s32.totalorder (!%p168_p9), %s539_s19, 1  ;;  %s187_s13 = sand.u32 (!%p168_p9), 1, %s482_s16  }
   0xe   : > { %171 = sbr.rel (%p168_p9) target bundleno = 437 (0x1b5), region = 32  ;;  %s375_s14 = sshll.u32 (!%p168_p9), %s187_s13, 3 }
   0xf   : > { %s379_s20 = sshll.u32 (!%p168_p9), %s539_s19, 3  ;;  %s448_s9 = scalar_lea.hbm (!%p168_p9), %s622_s3, 16 }
  0x13   : > { %s568_s27 = scalar_select %p196_p10, %s539_s19, 1  ;;  %v209_v1 = vlaneseq  ;;  %v492_v8 = vmov 0   ;;  %vm261_vm2 = vcmask 7168   ;;  %vm263_vm4 = vcmask 15360   ;;  %v230_v31 = vld [vmem:[%s620_s1] sm:$0xff] }
  0x14   : > { %422 = vset.pattern.permute.xlu1 %v492_v8  ;;  %423 = vset.pattern.permute.xlu0 %v492_v8  ;;  %v231_v36 = vld [vmem:[%s621_s2] sm:$0xff] }
  0x15   : > { %s376_s28 = sshll.u32 %s568_s27, 3  ;;  %v210_v2 = vand.u32 127, %v209_v1  ;;  %s280_s27 = scalar_lea.hbm %s622_s3, %s379_s20 }
  0x16   : > { %s199_s5 = scalar_lea.vmem %s619_s0, %s376_s28  ;;  %s203_s8 = scalar_lea.vmem %s623_s4, %s376_s28 }
  0x17   : > { %v204_v0 = vld [vmem:[%s199_s5] sm:$0xff]  ;;  %vm211_vm0 = vcmp.lt.s32.totalorder %v210_v2, 16  ;;  %s189_s28 = scalar_lea.vmem [#allocation2], %s375_s14  ;;  %s284_s30 = sshll.u32 %s280_s27, 4  ;;  %s285_s30 = int_to_ptr.hbm [resolvable:$true] %s284_s30 }
  0x18   : > { %205 = vadd.xlane.f32.xlu0 %v204_v0  ;;  %s282_s29 = sshll.u32 %s189_s28, 4  ;;  %s266_s5 = scalar_lea.sflag [#allocation3], %s187_s13  ;;  %s283_s29 = int_to_ptr.vmem [resolvable:$true] %s282_s29 }
  0x19   : > { %s442_s6 = sshra.s32 %s285_s30, 4  ;;  %s443_s6 = int_to_ptr.hbm [resolvable:$true] %s442_s6 }
  0x1a   : > { %s444_s7 = scalar_lea.hbm %s443_s6, 8  ;;  %p449_p0 = scmp.lt.s32.totalorder %s443_s6, %s622_s3 }
  0x1b   : > { %p445_p11 = scmp.ne.s32.totalorder %s443_s6, %s444_s7  ;;  %p450_p1 = scmp.lt.s32.totalorder %s448_s9, %s444_s7 }
  0x1d   : > { %p446_p12 = pnand %p445_p11, %p556_p5  ;;  %p451_p2 = por %p450_p1, %p449_p0 }
  0x1f   : > { %p447_p13 = pneg %p446_p12 }
  0x21   : > { %p452_p3 = pnand %p451_p2, %p447_p13 }
  0x8b   : > { %v206_v3 = vpop.xlane.xlu0 %205 }
  0x8c   : > { %v207_v4 = vmul.f32 0.0625, %v206_v3 }
  0x8e   : > { %v208_v5 = vsub.f32 %v204_v0, %v207_v4 }
  0x90   : > { %v212_v6 = vsel %vm211_vm0, %v208_v5, 0.0 }
  0x91   : > { %v213_v7 = vmul.f32 %v212_v6, %v212_v6 }
  0x93   : > { %214 = vadd.xlane.f32.xlu0 %v213_v7 }
 0x106   : > { %v215_v9 = vpop.xlane.xlu0 %214 }
 0x107   : > { %v216_v10 = vmul.f32 0.0625, %v215_v9 }
 0x109   : > { %v217_v11 = vadd.f32 1e-05, %v216_v10 }
 0x10b   : > { %424 = vrsqrt.f32 %v217_v11  ;;  %vm225_vm1 = vcmp.eq.f32.partialorder %v217_v11, inf  ;;  %v228_v19 = vand.u32 2147483648, %v217_v11  ;;  %vm227_vm3 = vcmp.eq.f32.partialorder %v217_v11, 0.0 }
 0x111   : > { %v425_v12 = vpop.eup %424 }
 0x112   : > { %v219_v13 = vmul.f32 %v425_v12, %v217_v11 }
 0x114   : > { %v220_v14 = vmul.f32 %v425_v12, %v219_v13 }
 0x116   : > { %v221_v15 = vmul.f32 0.5, %v220_v14 }
 0x118   : > { %v222_v16 = vsub.f32 1.5, %v221_v15 }
 0x11a   : > { %v223_v17 = vmul.f32 %v425_v12, %v222_v16 }
 0x11c   : > { %v224_v18 = vmul.f32 %v223_v17, %v217_v11 }
 0x11e   : > { %v226_v20 = vsel %vm225_vm1, %v217_v11, %v224_v18 }
 0x11f   : > { %v229_v21 = vsel %vm227_vm3, %v228_v19, %v226_v20 }
 0x120   : > { %v232_v22 = vadd.f32 1e-05, %v229_v21  ;;  %v262_v23 = vsel %vm261_vm2, %v207_v4, %v229_v21 }
 0x121   : > { %264 = vst.msk [vmem:[%s203_s8] sm:$0xff] %vm263_vm4, %v262_v23 }
 0x122   : > { %426 = vrcp.f32 %v232_v22  ;;  %v244_v27 = vand.u32 2147483648, %v232_v22  ;;  %v242_v29 = vand.u32 2147483647, %v232_v22  ;;  %vm238_vm6 = vweird.f32 %v232_v22 }
 0x124   : > { %v245_v32 = vor.u32 1.1754944e-38, %v244_v27  ;;  %vm243_vm8 = vcmp.eq.f32.partialorder %v242_v29, 8.507059e+37 }
 0x128   : > { %v427_v24 = vpop.eup %426 }
 0x129   : > { %v234_v25 = vmul.f32 %v427_v24, %v232_v22  ;;  %vm239_vm5 = vweird.f32 %v427_v24 }
 0x12a   : > { %vm240_vm7 = vmor %vm238_vm6, %vm239_vm5 }
 0x12b   : > { %v235_v26 = vsub.f32 1.0, %v234_v25 }
 0x12d   : > { %v236_v28 = vmul.f32 %v427_v24, %v235_v26 }
 0x12f   : > { %v237_v30 = vadd.f32 %v427_v24, %v236_v28 }
 0x131   : > { %v241_v33 = vsel %vm240_vm7, %v427_v24, %v237_v30 }
 0x132   : > { %v246_v34 = vsel %vm243_vm8, %v245_v32, %v241_v33 }
 0x133   : > { %v247_v35 = vmul.f32 %v246_v34, %v230_v31 }
 0x135   : > { %250 = vperm.xlu1 %422, %v247_v35  }
 0x13d   : > { %256 = vperm.xlu1 %422, %v231_v36  }
 0x1a7   : > { %v251_v37 = vpop.permute.xlu1 %250 }
 0x1a8   : > { %v253_v38 = vmul.f32 %v251_v37, %v212_v6 }
 0x1af   : > { %v257_v39 = vpop.permute.xlu1 %256 }
 0x1b0   : > { %v259_v40 = vadd.f32 %v257_v39, %v253_v38 }
 0x1b2   : > { %260 = vst [vmem:[%s189_s28] sm:$0xff] %v259_v40 }
 0x1b3   : > { %455 = shalt.err (!%p452_p3)
}
 0x1b4   : > { %382 = dma.vmem_to_hbm [thread:$0]  (%p556_p5), %s283_s29, 128, %s285_s30, %s266_s5  }
 0x1b5 PF: > { %p388_p4 = scmp.ge.s32.totalorder %s490_s18, 2  ;;  %s299_s12 = sand.u32 1, %s478_s15  }
 0x1b6   : > { %s300_s13 = scalar_lea.sflag [#allocation3], %s299_s12 }
 0x1b7   : > { %p385_p7 = pnand %p388_p4, %p560_p6 }
 0x1b9   : > { %p386_p8 = pneg %p385_p7 }
 0x1bb   : > { %473 = dma.done.wait (%p386_p8), %s300_s13, 128  }
 0x1bc   : > { %475 = vsyncadd (%p386_p8), %s300_s13, 4294967168  ;;  %p15_p9 = scmp.ge.s32.totalorder %s543_s21, 4   ;;  %s626_s15 = smov %s482_s16 }
 0x1bd   : > { %s627_s16 = smov %s486_s17  ;;  %s628_s17 = smov %s554_s24 }
 0x1be   : > { %s629_s18 = smov %s543_s21  ;;  %17 = sbr.rel (!%p15_p9) target bundleno = 3 (0x3), region = 79 }
 0x1c3   :  { %313 = vsyncpa [#allocation3], 1 }
 0x1c4   :  { %315 = vsyncpa [#allocation3 + $0x1], 1 }

</bundles_post_ra>
